<compile_context>
chip_gen: v7x
topology: tpu7x:2x2x1
jax: 0.10.0
libtpu: 0.0.40
codegen_flags: <defaults>
</compile_context>

<pallas_src>
import math

import jax
import jax.numpy as jnp
import numpy as np
from jax.experimental import pallas as pl
from jax.experimental.pallas import tpu as pltpu


def _cdiv(a, b):
    return -(-a // b)


def _lcm(ks):
    l = 1
    for k in ks:
        l = l * k // math.gcd(l, k)
    return l


def _physical_vmem_bytes():
    """Per-TensorCore VMEM capacity; conservative default (v7x: 64 MiB) if query fails."""
    try:
        info = pltpu.get_tpu_info()
        v = getattr(info, "vmem_capacity_bytes", None)
        if v:
            return int(v)
    except Exception:
        pass
    return 64 * 1024 * 1024


def _derive_tiles(B, T, C, work, itemsize, tile_budget):
    """Pick (Bb, Tb, Cb, nT) so the double-buffered input+output tiles fit tile_budget."""
    factor = 1.0 + sum(1.0 / k for k in work)      # output rows per input row (approx)
    t_unit = 8 * _lcm(work)                        # whole windows for every k, sublane-aligned

    def fp(bb, tb, cb):                            # double-buffered footprint (bytes)
        return 2.0 * bb * tb * cb * itemsize * factor

    # --- channel block: lane-dense multiple of 128; ragged tail block is masked ---
    if C < 128:
        Cb = C                                     # lane-sparse (normally XLA fallback)
    else:
        top = min(512, 128 * (C // 128))           # >=512-wide tiles already ~roofline
        Cb = 128
        for cb in range(top, 127, -128):
            if fp(1, min(T, t_unit), cb) <= tile_budget:
                Cb = cb
                break

    # --- time block: full T if it fits, else the largest multiple of t_unit that fits ---
    if fp(1, T, Cb) <= tile_budget or T <= t_unit:
        Tb, nT = T, 1
    else:
        n_units = max(1, int(tile_budget // fp(1, t_unit, Cb)))
        Tb = t_unit * n_units
        if Tb >= T:
            Tb, nT = T, 1
        else:
            nT = _cdiv(T, Tb)

    # --- batch block: as much batch as still fits the budget ---
    Bb = max(1, min(B, int(tile_budget // max(fp(1, Tb, Cb), 1.0))))

    # --- megacore: never collapse the grid to a single step (v7x has 2 TCs) ---
    if _cdiv(B, Bb) * nT * _cdiv(C, Cb) < 2:
        if B >= 2:
            Bb = _cdiv(B, 2)
        elif Cb >= 256:
            Cb = 128 * max(1, (Cb // 128) // 2)

    return Bb, Tb, Cb, nT


def _make_down_kernel(T, tb_in, nT, ks, method, out_tbs):
    """x_ref: (Bb, tb_in, Cb); one o_ref per scale k with shape (Bb, out_tbs[i], Cb)."""

    def kernel(x_ref, *o_refs):
        ti = pl.program_id(1)
        for k, o_ref, otb in zip(ks, o_refs, out_tbs):
            n_out = _cdiv(T, k)
            rem = T % k
            if method == 'interval_sampling':
                # out[n] = x[n*k]: pure strided sublane load, no compute.  Valid
                # windows never touch the replicate pad; reads of padded/ragged
                # rows only feed output rows Pallas masks on writeback.
                # TODO(synk): for bf16 inputs / large odd k, check the Mosaic dump of
                # this strided load; if it lowers to a gather, upcast the tile into an
                # f32 VMEM scratch first (or use a small MXU pooling matmul instead).
                o_ref[...] = x_ref[:, pl.ds(0, otb, stride=k), :]
            else:  # 'average_pooling'
                inv_k = 1.0 / k
                # Windows whose k rows are guaranteed inside this x tile.
                if nT > 1:
                    full_w = otb                   # tb_in % k == 0 by construction
                else:
                    full_w = n_out if rem == 0 else n_out - 1
                if full_w > 0:
                    acc = x_ref[:, pl.ds(0, full_w, stride=k), :].astype(jnp.float32)
                    for j in range(1, k):
                        acc = acc + x_ref[:, pl.ds(j, full_w, stride=k), :].astype(jnp.float32)
                    o_ref[:, :full_w, :] = (acc * inv_k).astype(o_ref.dtype)
                if rem != 0:
                    # Replicate-pad tail: rem real rows + (k-rem) copies of x[T-1],
                    # folded analytically.  Because tb_in % k == 0 when time-blocked,
                    # the tail window lives entirely inside the LAST time block.
                    base = (nT - 1) * tb_in
                    w_loc = (n_out - 1) - base // k
                    t_loc = (n_out - 1) * k - base
                    last_loc = (T - 1) - base

                    def _tail(k=k, o_ref=o_ref, rem=rem, inv_k=inv_k,
                              w_loc=w_loc, t_loc=t_loc, last_loc=last_loc):
                        tail = x_ref[:, t_loc:t_loc + rem, :].astype(jnp.float32)
                        s = jnp.sum(tail, axis=1, keepdims=True)
                        s = s + float(k - rem) * x_ref[:, last_loc:last_loc + 1, :].astype(jnp.float32)
                        o_ref[:, w_loc:w_loc + 1, :] = (s * inv_k).astype(o_ref.dtype)

                    if nT == 1:
                        _tail()
                    else:
                        pl.when(ti == nT - 1)(_tail)

    return kernel


def _down_xla(x, ks, method):
    """Plain-XLA path (lane-sparse channels, or very sparse interval sampling)."""
    B, T, C = x.shape
    outs = []
    for k in ks:
        k = int(k)
        if k == 1:
            outs.append(x)
            continue
        n_out = _cdiv(T, k)
        if method == 'interval_sampling':
            outs.append(x[:, ::k, :])
        else:
            pad = n_out * k - T
            xp = x
            if pad:
                xp = jnp.concatenate([x, jnp.repeat(x[:, -1:, :], pad, axis=1)], axis=1)
            outs.append(jnp.mean(xp.reshape(B, n_out, k, C), axis=2).astype(x.dtype))
    return outs


def ms_utils_down(x, kernels, method='interval_sampling', *, tile_vmem_bytes=None,
                  xla_fallback=True):
    """JAX/Pallas equivalent of MS_Utils.forward(x_enc) == MS_Utils.down(x_enc).

    x : (B, T, C); returns a list of arrays, one per kernel, each (B, ceil(T/k), C).
    `tile_vmem_bytes` optionally overrides the auto-derived tile budget (testing).
    """
    if method not in ('interval_sampling', 'average_pooling'):
        raise ValueError(f"unknown method {method!r}")

    B, T, C = x.shape
    ks = [int(k) for k in kernels]
    work = list(dict.fromkeys(k for k in ks if k > 1))   # k == 1 is the identity

    if not work:
        return [x for _ in ks]

    if xla_fallback:
        # Lane-sparse channels: last-dim < 128 wastes 128/C of every vreg/DMA and
        # forces masked partial stores -- a kernel launch only adds overhead.
        if C < 128:
            return _down_xla(x, ks, method)
        # Sparse interval sampling (sum 1/k << 1): the fused kernel would read all
        # of x only to write a small fraction; per-scale strided slices win.
        if method == 'interval_sampling' and sum(1.0 / k for k in work) < 0.25:
            return _down_xla(x, ks, method)

    itemsize = jnp.dtype(x.dtype).itemsize
    phys = _physical_vmem_bytes()
    limit_cap = min(int(phys * 0.75), 112 * 1024 * 1024)  # ~48 MiB v7x, ~96 MiB v5e/v6e
    tile_budget = int(tile_vmem_bytes) if tile_vmem_bytes else int(limit_cap * 0.65)

    Bb, Tb, Cb, nT = _derive_tiles(B, T, C, work, itemsize, tile_budget)
    tb_in = Tb if nT > 1 else T
    n_out = {k: _cdiv(T, k) for k in work}
    out_tbs = [Tb // k if nT > 1 else n_out[k] for k in work]

    grid = (_cdiv(B, Bb), nT, _cdiv(C, Cb))

    # Size the scoped VMEM limit to the actual double-buffered tile footprint
    # (with headroom) instead of a hard-coded constant.
    needed = 2 * Bb * Cb * itemsize * (tb_in + sum(out_tbs))
    vmem_limit = min(limit_cap, max(32 * 1024 * 1024, 2 * needed))
    vmem_limit = int(min(int(phys * 0.9), max(vmem_limit, needed + (2 << 20))))

    kernel = _make_down_kernel(T, tb_in, nT, work, method, out_tbs)
    outs = pl.pallas_call(
        kernel,
        out_shape=[jax.ShapeDtypeStruct((B, n_out[k], C), x.dtype) for k in work],
        grid=grid,
        # If profiling shows exposed DMA, sweep pipeline_mode=pl.Buffered(3) on the x
        # BlockSpec (subtract the extra buffer from the v7x 64 MiB budget first).
        in_specs=[pl.BlockSpec((Bb, tb_in, Cb), lambda bi, ti, ci: (bi, ti, ci))],
        out_specs=[pl.BlockSpec((Bb, otb, Cb), lambda bi, ti, ci: (bi, ti, ci))
                   for otb in out_tbs],
        compiler_params=pltpu.CompilerParams(
            dimension_semantics=("parallel", "parallel", "parallel"),
            vmem_limit_bytes=vmem_limit),
    )(x)

    results = {1: x}
    results.update(dict(zip(work, outs)))
    return [results[k] for k in ks]


if __name__ == "__main__":
    key = jax.random.PRNGKey(0)

    def ref_down(x_np, ks, method):
        B, T, C = x_np.shape
        outs = []
        for k in ks:
            n = math.ceil(T / k)
            if k == 1:
                outs.append(x_np)
                continue
            if method == 'interval_sampling':
                outs.append(x_np[:, ::k, :])
            else:
                pad = n * k - T
                xp = x_np
                if pad:
                    xp = np.concatenate([x_np, np.repeat(x_np[:, -1:, :], pad, axis=1)], axis=1)
                outs.append(xp.reshape(B, n, k, C).mean(axis=2))
        return outs

    cases = [
        # (B, T, C, kernels, tile_vmem_bytes) -- small shapes, each exercising a path
        (2, 16, 4,    (1, 2, 3, 4), None),         # lane-sparse C   -> XLA fast path
        (2, 32, 128,  (1, 2, 3, 4), None),         # Pallas, single time block
        (2, 200, 128, (1, 2, 3, 4), 300 * 1024),   # Pallas, forced time blocking + ragged tail
    ]

    for (B, T, C, ks, budget) in cases:
        key, sub = jax.random.split(key)
        x = jax.random.normal(sub, (B, T, C), dtype=jnp.float32)
        x_np = np.asarray(x)
        for method in ('interval_sampling', 'average_pooling'):
            outs = ms_utils_down(x, ks, method, tile_vmem_bytes=budget)
            outs = [np.asarray(jax.block_until_ready(o)) for o in outs]
            refs = ref_down(x_np, ks, method)
            for k, o, r in zip(ks, outs, refs):
                assert o.shape == r.shape, (k, o.shape, r.shape)
                np.testing.assert_allclose(o, r, rtol=1e-5, atol=1e-5)

    print("KERNEL_OK")
</pallas_src>

<mosaic_0001>
module attributes {stable_mosaic.version = 11 : i64} {
  func.func @kernel(%arg0: i32, %arg1: i32, %arg2: i32, %arg3: memref<1x32x128xf32, #tpu.memory_space<vmem>>, %arg4: memref<1x16x128xf32, #tpu.memory_space<vmem>>, %arg5: memref<1x11x128xf32, #tpu.memory_space<vmem>>, %arg6: memref<1x8x128xf32, #tpu.memory_space<vmem>>) attributes {dimension_semantics = [#tpu.dimension_semantics<parallel>, #tpu.dimension_semantics<parallel>, #tpu.dimension_semantics<parallel>], iteration_bounds = array<i64: 2, 1, 1>, scalar_prefetch = 0 : i64, scratch_operands = 0 : i64, tpu.core_type = #tpu.core_type<tc>, window_params = [{transform_indices = @transform_0, window_bounds = array<i64: 1, 32, 128>}, {transform_indices = @transform_1, window_bounds = array<i64: 1, 16, 128>}, {transform_indices = @transform_2, window_bounds = array<i64: 1, 11, 128>}, {transform_indices = @transform_3, window_bounds = array<i64: 1, 8, 128>}]} {
    %c0 = arith.constant 0 : index
    %c0_0 = arith.constant 0 : index
    %c0_1 = arith.constant 0 : index
    %0 = tpu.strided_load %arg3[%c0, %c0_0, %c0_1] {strides = array<i32: 1, 2, 1>} : memref<1x32x128xf32, #tpu.memory_space<vmem>>, vector<1x16x128xf32>
    %c0_2 = arith.constant 0 : index
    %c0_3 = arith.constant 0 : index
    %c0_4 = arith.constant 0 : index
    %1 = vector.load %arg4[%c0_2, %c0_3, %c0_4] : memref<1x16x128xf32, #tpu.memory_space<vmem>>, vector<1x16x128xf32>
    tpu.vector_store %arg4[%c0_2, %c0_3, %c0_4], %0 {strides = array<i32>} : memref<1x16x128xf32, #tpu.memory_space<vmem>>, vector<1x16x128xf32>,
    %c0_5 = arith.constant 0 : index
    %c0_6 = arith.constant 0 : index
    %c0_7 = arith.constant 0 : index
    %2 = tpu.strided_load %arg3[%c0_5, %c0_6, %c0_7] {strides = array<i32: 1, 3, 1>} : memref<1x32x128xf32, #tpu.memory_space<vmem>>, vector<1x11x128xf32>
    %c0_8 = arith.constant 0 : index
    %c0_9 = arith.constant 0 : index
    %c0_10 = arith.constant 0 : index
    %3 = vector.load %arg5[%c0_8, %c0_9, %c0_10] : memref<1x11x128xf32, #tpu.memory_space<vmem>>, vector<1x11x128xf32>
    tpu.vector_store %arg5[%c0_8, %c0_9, %c0_10], %2 {strides = array<i32>} : memref<1x11x128xf32, #tpu.memory_space<vmem>>, vector<1x11x128xf32>,
    %c0_11 = arith.constant 0 : index
    %c0_12 = arith.constant 0 : index
    %c0_13 = arith.constant 0 : index
    %4 = tpu.strided_load %arg3[%c0_11, %c0_12, %c0_13] {strides = array<i32: 1, 4, 1>} : memref<1x32x128xf32, #tpu.memory_space<vmem>>, vector<1x8x128xf32>
    %c0_14 = arith.constant 0 : index
    %c0_15 = arith.constant 0 : index
    %c0_16 = arith.constant 0 : index
    %5 = vector.load %arg6[%c0_14, %c0_15, %c0_16] : memref<1x8x128xf32, #tpu.memory_space<vmem>>, vector<1x8x128xf32>
    tpu.vector_store %arg6[%c0_14, %c0_15, %c0_16], %4 {strides = array<i32>} : memref<1x8x128xf32, #tpu.memory_space<vmem>>, vector<1x8x128xf32>,
    return
  }
  func.func @transform_0(%arg0: i32, %arg1: i32, %arg2: i32) -> (i32, i32, i32) {
    %c0_i32 = arith.constant 0 : i32
    return %arg0, %arg1, %arg2 : i32, i32, i32
  }
  func.func @transform_1(%arg0: i32, %arg1: i32, %arg2: i32) -> (i32, i32, i32) {
    %c0_i32 = arith.constant 0 : i32
    return %arg0, %arg1, %arg2 : i32, i32, i32
  }
  func.func @transform_2(%arg0: i32, %arg1: i32, %arg2: i32) -> (i32, i32, i32) {
    %c0_i32 = arith.constant 0 : i32
    return %arg0, %arg1, %arg2 : i32, i32, i32
  }
  func.func @transform_3(%arg0: i32, %arg1: i32, %arg2: i32) -> (i32, i32, i32) {
    %c0_i32 = arith.constant 0 : i32
    return %arg0, %arg1, %arg2 : i32, i32, i32
  }
}

</mosaic_0001>

<bundles_post_ra>
// kernel: tpu_custom_call.1
= control target key start
LH: loop header
LB: loop body
LE: loop exit
PB: predicated region body
PF: predicated region fallthrough
CT: control target
= control target key end

     0   :  { %9 = vsyncpa [#allocation3], 0  ;;  %s976_s0 = inlined_call_operand.hbm [shape: f32[2,32,128], index: 0, kind: input, shape index: {}]   ;;  %s977_s1 = inlined_call_operand.hbm [shape: f32[2,16,128], index: 1, kind: output, shape index: {0}]   ;;  %s978_s2 = inlined_call_operand.vmem [shape: f32[2,11,128], index: 2, kind: output, shape index: {1}]   ;;  %s979_s3 = inlined_call_operand.hbm [shape: f32[2,8,128], index: 3, kind: output, shape index: {2}]  }
   0x1   :  { %11 = vsyncpa [#allocation3 + $0x1], 0 }
   0x2   :  { %12 = vsyncpa [#allocation4], 0 }
   0x3   :  { %14 = vsyncpa [#allocation4 + $0x1], 0 }
   0x4   :  { %15 = vsyncpa [#allocation7], 0 }
   0x5   :  { %17 = vsyncpa [#allocation7 + $0x1], 0  ;;  %s771_s12 = smov 0   ;;  %s773_s13 = smov 0  }
   0x6   :  { %s775_s14 = smov 0   ;;  %s777_s15 = smov 0  }
   0x7   :  { %s779_s16 = smov 0   ;;  %s781_s17 = smov 0  }
   0x8 LB: > { %s502_s18 = sadd.s32 4294967295, %s742_s17   ;;  %s503_s19 = sadd.s32 4294967294, %s742_s17   ;;  %s742_s17 = sphi %s781_s17, %s23_s17   ;;  %s738_s16 = sphi %s779_s16, %s994_s16   ;;  %s734_s15 = sphi %s777_s15, %s993_s15   ;;  %s730_s14 = sphi %s775_s14, %s992_s14   ;;  %s726_s13 = sphi %s773_s13, %s991_s13   ;;  %s722_s12 = sphi %s771_s12, %s990_s12  }
   0x9   : > { %s42_s20 = sadd.s32 1, %s738_s16  ;;  %s53_s21 = sadd.s32 1, %s730_s14 }
   0xa   : > { %p44_p0 = scmp.ge.s32.totalorder %s42_s20, 2  ;;  %p60_p1 = scmp.ne.s32.totalorder %s730_s14, %s726_s13 }
   0xb   : > { %p61_p2 = scmp.eq.s32.totalorder %s742_s17, 0  ;;  %p66_p3 = scmp.ne.s32.totalorder %s726_s13, %s722_s12 }
   0xc   : > { %s996_s20 = smov (%p44_p0, %s42_s20), 0  ;;  %p67_p5 = scmp.eq.s32.totalorder %s502_s18, 0 }
   0xd   : > { %p812_p4 = por %p61_p2, %p60_p1  ;;  %s46_s23 = ssub.s32 %s738_s16, %s996_s20 }
   0xe   : > { %p94_p6 = scmp.eq.s32.totalorder %s502_s18, 1  ;;  %p51_p7 = scmp.eq.s32.totalorder %s46_s23, 0 }
   0xf   : > { %p818_p8 = por %p67_p5, %p66_p3  ;;  %p100_p10 = scmp.eq.s32.totalorder %s503_s19, 1 }
  0x10   : > { %p822_p9 = por %p94_p6, %p60_p1  ;;  %p544_p13 = scmp.lt.s32.totalorder %s742_s17, 2 }
  0x11   : > { %s827_s26 = scalar_select %p51_p7, %s730_s14, %s53_s21  }
  0x12   : > { %s983_s25 = scalar_select %p822_p9, 1, 0 }
  0x13   : > { %p829_p11 = por %p100_p10, %p66_p3  ;;  %s180_s28 = sand.u32 1, %s730_s14  }
  0x14   : > { %s506_s29 = sshll.u32 %s180_s28, 5  ;;  %s524_s30 = sshll.u32 %s738_s16, 9 }
  0x15   : > { %s984_s27 = scalar_select %p829_p11, 1, 0 }
  0x16   : > { %s840_s6 = scalar_lea.hbm %s976_s0, %s524_s30  ;;  %s184_s7 = scalar_lea.vmem [#allocation2], %s506_s29 }
  0x17   : > { %s194_s8 = sshll.u32 %s184_s7, 4  ;;  %p846_p0 = pnand %p544_p13, %p812_p4  ;;  %s842_s8 = int_to_ptr.vmem [resolvable:$true] %s194_s8 }
  0x18   : > { %s851_s10 = scalar_lea.sflag [#allocation3], %s180_s28  ;;  %s598_s11 = scalar_lea.hbm %s840_s6, 512 }
  0x19   : > { %p599_p2 = scmp.ne.s32.totalorder %s840_s6, %s598_s11  ;;  %p600_p3 = pneg %p846_p0 }
  0x1a   : > { %s603_s21 = scalar_lea.hbm %s976_s0, 1024  ;;  %p604_p4 = scmp.lt.u32.totalorder %s840_s6, %s976_s0 }
  0x1b   : > { %p601_p5 = pnand %p600_p3, %p599_p2  ;;  %p605_p7 = scmp.lt.u32.totalorder %s603_s21, %s598_s11 }
  0x1c   : > { %p607_p13 = scmp.lt.u32.totalorder %s598_s11, %s840_s6 }
  0x1d   : > { %p602_p6 = pneg %p601_p5  ;;  %p606_p10 = por %p605_p7, %p604_p4 }
  0x1f   : > { %p608_p12 = por %p607_p13, %p606_p10 }
  0x21   : > { %p609_p1 = pnand %p608_p12, %p602_p6 }
  0x23   : > { %612 = shalt.err (!%p609_p1)
}
  0x24   : > { %s613_s28 = scalar_lea.vmem %s842_s8, 512  ;;  %s744_s29 = smov [#allocation2]  }
  0x25   : > { %p614_p2 = scmp.ne.s32.totalorder %s842_s8, %s613_s28  ;;  %s618_s30 = sshll.u32 %s744_s29, 4  ;;  %s619_s30 = int_to_ptr.vmem [resolvable:$false] %s618_s30 }
  0x26   : > { %s620_s4 = scalar_lea.vmem %s619_s30, 1024  ;;  %p621_p9 = scmp.lt.s32.totalorder %s842_s8, %s619_s30 }
  0x27   : > { %p616_p5 = pnand %p614_p2, %p600_p3  ;;  %p622_p4 = scmp.lt.s32.totalorder %s620_s4, %s613_s28 }
  0x29   : > { %p617_p11 = pneg %p616_p5  ;;  %p623_p7 = por %p622_p4, %p621_p9 }
  0x2b   : > { %p624_p10 = pnand %p623_p7, %p617_p11 }
  0x2d   : > { %627 = shalt.err (!%p624_p10)
}
  0x2e   : > { %s745_s5 = smov 128   ;;  %s746_s7 = smov 8  }
  0x2f   : > { %536 = dma.hbm_to_vmem [thread:$0]  (!%p846_p0), %s840_s6, 512, %s842_s8, %s851_s10, %s745_s5, %s745_s5, %s746_s7  }
  0x30   : > { %p202_p12 = scmp.lt.s32.totalorder %s742_s17, 3  ;;  %p986_p1 = scmp.ge.s32.totalorder %s742_s17, 1 }
  0x32   : > { %p203_p3 = pnand %p986_p1, %p202_p12 }
  0x33   : > { %s883_s11 = sand.u32 (!%p203_p3), 1, %s726_s13  }
  0x34   : > { %206 = sbr.rel (%p203_p3) target bundleno = 115 (0x73), region = 24  ;;  %s510_s18 = sshll.u32 (!%p203_p3), %s883_s11, 5 }
  0x35   : > { %s209_s19 = scalar_lea.sflag (!%p203_p3), [#allocation3], %s883_s11  ;;  %s212_s21 = scalar_lea.vmem (!%p203_p3), [#allocation2], %s510_s18 }
  0x3b   : > { %709 = dma.done.wait (%p818_p8), %s209_s19, 512  }
  0x3c   : > { %711 = vsyncadd (%p818_p8), %s209_s19, 4294966784  ;;  %s511_s6 = sshll.u32 %s883_s11, 4  ;;  %s512_s8 = sshll.u32 %s883_s11, 3  ;;  %v267_v0 = vld [vmem:[%s212_s21] ss:$2 sm:$0xff] }
  0x3d   : > { %s230_s9 = scalar_lea.vmem [#allocation5], %s511_s6  ;;  %s251_s22 = scalar_lea.vmem [#allocation6], %s512_s8  ;;  %v515_v1 = vld [vmem:[%s212_s21 + $0x10] ss:$2 sm:$0xff] }
  0x3e   : > { %s313_s10 = sshll.u32 %s230_s9, 4  ;;  %s335_s23 = sshll.u32 %s251_s22, 4  ;;  %v277_v2 = vld [vmem:[%s212_s21] ss:$4 sm:$0xff]  ;;  %270 = vst [vmem:[%s230_s9] sm:$0xff] %v267_v0  ;;  %271 = vst [vmem:[%s230_s9 + $0x8] sm:$0xff] %v515_v1  ;;  %s896_s10 = int_to_ptr.vmem [resolvable:$true] %s313_s10  ;;  %s903_s23 = int_to_ptr.vmem [resolvable:$true] %s335_s23 }
  0x3f   : > { %p255_p9 = scmp.lt.s32.totalorder %s734_s15, 1  ;;  %s526_s28 = sshll.u32 %s734_s15, 8  ;;  %278 = vst [vmem:[%s251_s22] sm:$0xff] %v277_v2  ;;  %v272_v3 = vld [vmem:[%s212_s21] ss:$3 sm:$0xff] }
  0x40   : > { %s901_s4 = scalar_lea.hbm %s977_s1, %s526_s28  ;;  %v516_v4 = vld [vmem:[%s212_s21 + $0x18] ss:$3 sm:$0x7]  ;;  %s280_s6 = scalar_lea.sflag [#allocation4], %s883_s11 }
  0x41   : > { %s256_s29 = scalar_select %p255_p9, %s734_s15, 1 }
  0x42   : > { %s628_s8 = scalar_lea.vmem %s896_s10, 256  ;;  %p987_p11 = scmp.ne.s32.totalorder %s983_s25, 0 }
  0x43   : > { %s525_s5 = sshll.u32 %s256_s29, 4  ;;  %p629_p8 = scmp.ne.s32.totalorder %s896_s10, %s628_s8 }
  0x44   : > { %s265_s19 = scalar_lea.vmem %s978_s2, %s525_s5  ;;  %s747_s9 = smov [#allocation5]  }
  0x45   : > { %275 = vst [vmem:[%s265_s19] sm:$0xff] %v272_v3  ;;  %276 = vst [vmem:[%s265_s19 + $0x8] sm:$0x7] %v516_v4  ;;  %p630_p0 = pnand %p629_p8, %p987_p11  ;;  %s632_s22 = sshll.u32 %s747_s9, 4  ;;  %s633_s22 = int_to_ptr.vmem [resolvable:$false] %s632_s22 }
  0x46   : > { %s634_s28 = scalar_lea.vmem %s633_s22, 512  ;;  %p635_p13 = scmp.lt.s32.totalorder %s896_s10, %s633_s22 }
  0x47   : > { %p631_p6 = pneg %p630_p0  ;;  %p636_p2 = scmp.lt.s32.totalorder %s634_s28, %s628_s8 }
  0x49   : > { %p637_p5 = por %p636_p2, %p635_p13 }
  0x4b   : > { %p638_p4 = pnand %p637_p5, %p631_p6 }
  0x4d   : > { %641 = shalt.err (!%p638_p4)
}
  0x4e   : > { %s642_s21 = scalar_lea.hbm %s901_s4, 256  ;;  %s646_s30 = scalar_lea.hbm %s977_s1, 512 }
  0x4f   : > { %p643_p7 = scmp.ne.s32.totalorder %s901_s4, %s642_s21  ;;  %p647_p1 = scmp.lt.u32.totalorder %s901_s4, %s977_s1 }
  0x50   : > { %p648_p3 = scmp.lt.u32.totalorder %s646_s30, %s642_s21  ;;  %p650_p8 = scmp.lt.u32.totalorder %s642_s21, %s901_s4 }
  0x51   : > { %p644_p10 = pnand %p643_p7, %p987_p11 }
  0x52   : > { %p649_p9 = por %p648_p3, %p647_p1 }
  0x53   : > { %p645_p12 = pneg %p644_p10 }
  0x54   : > { %p651_p0 = por %p650_p8, %p649_p9 }
  0x56   : > { %p652_p6 = pnand %p651_p0, %p645_p12 }
  0x58   : > { %655 = shalt.err (!%p652_p6)
}
  0x59   : > { %s748_s18 = smov 128   ;;  %s749_s19 = smov 8  }
  0x5a   : > { %529 = dma.vmem_to_hbm [thread:$0]  (%p987_p11), %s896_s10, 256, %s901_s4, %s280_s6, %s748_s18, %s748_s18, %s749_s19  }
  0x5b   : > { %s521_s8 = sshll.u32 %s734_s15, 7  ;;  %s297_s21 = scalar_lea.sflag [#allocation7], %s883_s11 }
  0x5c   : > { %s333_s28 = scalar_lea.hbm %s979_s3, %s521_s8  ;;  %s656_s29 = scalar_lea.vmem %s903_s23, 128 }
  0x5d   : > { %p657_p13 = scmp.ne.s32.totalorder %s903_s23, %s656_s29  ;;  %s750_s24 = smov [#allocation6]  }
  0x5e   : > { %s660_s30 = sshll.u32 %s750_s24, 4  ;;  %s661_s30 = int_to_ptr.vmem [resolvable:$false] %s660_s30 }
  0x5f   : > { %p658_p2 = pnand %p657_p13, %p987_p11  ;;  %s662_s5 = scalar_lea.vmem %s661_s30, 256 }
  0x60   : > { %p663_p4 = scmp.lt.s32.totalorder %s903_s23, %s661_s30  ;;  %p664_p7 = scmp.lt.s32.totalorder %s662_s5, %s656_s29 }
  0x61   : > { %p659_p5 = pneg %p658_p2 }
  0x62   : > { %p665_p10 = por %p664_p7, %p663_p4 }
  0x64   : > { %p666_p12 = pnand %p665_p10, %p659_p5 }
  0x66   : > { %669 = shalt.err (!%p666_p12)
}
  0x67   : > { %s670_s15 = scalar_lea.hbm %s333_s28, 128  ;;  %s674_s4 = scalar_lea.hbm %s979_s3, 256 }
  0x68   : > { %p671_p1 = scmp.ne.s32.totalorder %s333_s28, %s670_s15  ;;  %p675_p8 = scmp.lt.u32.totalorder %s333_s28, %s979_s3 }
  0x69   : > { %p676_p0 = scmp.lt.u32.totalorder %s674_s4, %s670_s15  ;;  %p678_p13 = scmp.lt.u32.totalorder %s670_s15, %s333_s28 }
  0x6a   : > { %p672_p3 = pnand %p671_p1, %p987_p11 }
  0x6b   : > { %p677_p6 = por %p676_p0, %p675_p8 }
  0x6c   : > { %p673_p9 = pneg %p672_p3 }
  0x6d   : > { %p679_p2 = por %p678_p13, %p677_p6 }
  0x6f   : > { %p680_p5 = pnand %p679_p2, %p673_p9 }
  0x71   : > { %683 = shalt.err (!%p680_p5)
}
  0x72   : > { %530 = dma.vmem_to_hbm [thread:$0]  (%p987_p11), %s903_s23, 128, %s333_s28, %s297_s21  }
  0x73 PF: > { %s347_s18 = sand.u32 1, %s722_s12   ;;  %p988_p4 = scmp.ne.s32.totalorder %s984_s27, 0 }
  0x74   : > { %p989_p7 = scmp.ge.s32.totalorder %s742_s17, 2  ;;  %s348_s19 = scalar_lea.sflag [#allocation4], %s347_s18 }
  0x76   : > { %p538_p10 = pnand %p989_p7, %p988_p4 }
  0x78   : > { %713 = dma.done.wait (!%p538_p10), %s348_s19, 256  }
  0x79   : > { %715 = vsyncadd (!%p538_p10), %s348_s19, 4294967040  ;;  %s372_s8 = scalar_lea.sflag [#allocation7], %s347_s18 }
  0x7a   : > { %717 = dma.done.wait (!%p538_p10), %s372_s8, 128  }
  0x7b   : > { %719 = vsyncadd (!%p538_p10), %s372_s8, 4294967168  ;;  %s23_s17 = sadd.s32 1, %s742_s17   ;;  %s990_s12 = smov %s726_s13 }
  0x7c   : > { %p20_p12 = scmp.ge.s32.totalorder %s23_s17, 4   ;;  %s991_s13 = smov %s730_s14 }
  0x7d   : > { %s992_s14 = smov %s827_s26  ;;  %s993_s15 = smov %s738_s16 }
  0x7e   : > { %s994_s16 = smov %s996_s20  ;;  %22 = sbr.rel (!%p20_p12) target bundleno = 8 (0x8), region = 100 }
  0x85   :  { %377 = vsyncpa [#allocation3], 1 }
  0x86   :  { %379 = vsyncpa [#allocation3 + $0x1], 1 }
  0x87   :  { %380 = vsyncpa [#allocation4], 1 }
  0x88   :  { %382 = vsyncpa [#allocation4 + $0x1], 1 }
  0x89   :  { %383 = vsyncpa [#allocation7], 1 }
  0x8a   :  { %385 = vsyncpa [#allocation7 + $0x1], 1 }

</bundles_post_ra>
